<compile_context>
chip_gen: v5e
topology: v5e:2x2
jax: 0.10.0
libtpu: 0.0.40
codegen_flags: <defaults>
</compile_context>

<pallas_src>
import jax
import jax.numpy as jnp
from jax.experimental import pallas as pl
from jax.experimental.pallas import tpu as pltpu


def _pick_first_kernel(x_ref, o_ref):
    # x_ref / o_ref are (B, H*W) VMEM tiles; the input BlockSpec already
    # selected the leading H*W columns (== the n == 0 slice), so this is one
    # full-width VMEM copy.
    o_ref[...] = x_ref[...]


def pick_first(x):
    """x: (B, N, H, W) -> (B, 1, H, W), equivalent to torch x[:, 0:1, ...]."""
    B, N, H, W = x.shape
    hw = H * W

    # Row-major view: row b is [x[b,0,:,:], x[b,1,:,:], ...] flattened, so the
    # first N-slice is columns [0:hw).  This reshape is a free view.
    x2d = x.reshape(B, N * hw)

    out2d = pl.pallas_call(
        _pick_first_kernel,
        out_shape=jax.ShapeDtypeStruct((B, hw), x.dtype),
        grid=(1,),
        # One block covering all batches and the first hw columns of each row.
        in_specs=[pl.BlockSpec((B, hw), lambda i: (0, 0))],
        out_specs=pl.BlockSpec((B, hw), lambda i: (0, 0)),
        compiler_params=pltpu.CompilerParams(
            dimension_semantics=("arbitrary",)
        ),
    )(x2d)

    return out2d.reshape(B, 1, H, W)


if __name__ == "__main__":
    key = jax.random.PRNGKey(0)
    # Small shapes consistent with the module: batch=2, N=4, spatial=16x16.
    x = jax.random.normal(key, (2, 4, 16, 16), dtype=jnp.float32)

    out = pick_first(x)
    out = jax.block_until_ready(out)

    # Reference semantics check: x[:, 0:1, ...]
    ref = x[:, 0:1, ...]
    assert out.shape == (2, 1, 16, 16), out.shape
    assert out.dtype == x.dtype
    assert jnp.array_equal(out, ref)

    print("KERNEL_OK")
</pallas_src>

<mosaic_0001>
module attributes {stable_mosaic.version = 11 : i64} {
  func.func @_pick_first_kernel(%arg0: i32, %arg1: memref<2x256xf32, #tpu.memory_space<vmem>>, %arg2: memref<2x256xf32, #tpu.memory_space<vmem>>) attributes {dimension_semantics = [#tpu.dimension_semantics<arbitrary>], iteration_bounds = array<i64: 1>, scalar_prefetch = 0 : i64, scratch_operands = 0 : i64, tpu.core_type = #tpu.core_type<tc>, window_params = [{transform_indices = @transform_0, window_bounds = array<i64: 2, 256>}, {pipeline_mode = #tpu.pipeline_mode<synchronous>, transform_indices = @transform_1, window_bounds = array<i64: 2, 256>}]} {
    %c0 = arith.constant 0 : index
    %c0_0 = arith.constant 0 : index
    %0 = vector.load %arg1[%c0, %c0_0] : memref<2x256xf32, #tpu.memory_space<vmem>>, vector<2x256xf32>
    %c0_1 = arith.constant 0 : index
    %c0_2 = arith.constant 0 : index
    %1 = vector.load %arg2[%c0_1, %c0_2] : memref<2x256xf32, #tpu.memory_space<vmem>>, vector<2x256xf32>
    tpu.vector_store %arg2[%c0_1, %c0_2], %0 {strides = array<i32>} : memref<2x256xf32, #tpu.memory_space<vmem>>, vector<2x256xf32>,
    return
  }
  func.func @transform_0(%arg0: i32) -> (i32, i32) {
    %c0_i32 = arith.constant 0 : i32
    %c0_i32_0 = arith.constant 0 : i32
    %c0_i32_1 = arith.constant 0 : i32
    return %c0_i32, %c0_i32_0 : i32, i32
  }
  func.func @transform_1(%arg0: i32) -> (i32, i32) {
    %c0_i32 = arith.constant 0 : i32
    %c0_i32_0 = arith.constant 0 : i32
    %c0_i32_1 = arith.constant 0 : i32
    return %c0_i32, %c0_i32_0 : i32, i32
  }
}

</mosaic_0001>

<bundles_post_ra>
// kernel: tpu_custom_call.1
= control target key start
LH: loop header
LB: loop body
LE: loop exit
PB: predicated region body
PF: predicated region fallthrough
CT: control target
= control target key end

     0   :  { %6 = vsyncpa [#allocation3], 0  ;;  %s114_s0 = inlined_call_operand.hbm [shape: f32[2,1024], index: 0, kind: input, shape index: {}]   ;;  %s115_s1 = inlined_call_operand.hbm [shape: f32[2,256], index: 1, kind: output, shape index: {}]  }
   0x1   :  { %7 = vsyncpa [#allocation4], 0  ;;  %s13_s8 = sshll.u32 %s114_s0, 4  ;;  %s96_s9 = smov [#allocation2]   ;;  %s14_s8 = int_to_ptr.hbm [resolvable:$true] %s13_s8 }
   0x2   :  { %s15_s10 = sshll.u32 %s96_s9, 4  ;;  %s16_s10 = int_to_ptr.vmem [resolvable:$true] %s15_s10 }
   0x3   :  { %18 = dma.hbm_to_vmem [thread:$0]  %s14_s8, 64, %s16_s10, [#allocation3]  }
   0x4   :  { %92 = dma.done.wait [#allocation3], 64  }
   0x5   :  { %93 = vsyncadd [#allocation3], 4294967232  ;;  %s97_s11 = smov [#allocation5]   ;;  %s32_s15 = sshll.u32 %s115_s1, 4  ;;  %v23_v0 = vld [vmem:[#allocation2] sm:$0xf]  ;;  %s33_s15 = int_to_ptr.hbm [resolvable:$true] %s32_s15 }
   0x6   :  { %s30_s12 = sshll.u32 %s97_s11, 4  ;;  %24 = vst [vmem:[#allocation5] sm:$0xf] %v23_v0  ;;  %s31_s12 = int_to_ptr.vmem [resolvable:$true] %s30_s12 }
   0x7   :  { %35 = dma.vmem_to_hbm [thread:$0]  %s31_s12, 64, %s33_s15, [#allocation4]  }
   0x8   :  { %94 = dma.done.wait [#allocation4], 64  }
   0x9   :  { %95 = vsyncadd [#allocation4], 4294967232 }
   0xa   :  { %40 = vsyncpa [#allocation3], 1 }
   0xb   :  { %41 = vsyncpa [#allocation4], 1 }

</bundles_post_ra>
